<compile_context>
chip_gen: v7x
topology: tpu7x:2x2x1
jax: 0.10.0
libtpu: 0.0.40
codegen_flags: <defaults>
</compile_context>

<pallas_src>
import functools

import jax
import jax.numpy as jnp
from jax import lax
from jax.experimental import pallas as pl
from jax.experimental.pallas import tpu as pltpu


def _spa_kernel(xq_ref, xkv_ref, wq_ref, bq_ref, wk_ref, bk_ref, wv_ref, bv_ref,
                wo_ref, bo_ref, o_ref, acc_ref, *, inv_scale: float):
    h = pl.program_id(2)

    @pl.when(h == 0)
    def _init():
        acc_ref[...] = jnp.zeros_like(acc_ref)

    xq = xq_ref[0]      # (tq, H)  bf16
    xkv = xkv_ref[0]    # (S,  H)  bf16

    # Per-head projections: bf16 MXU matmuls, f32 accumulation, f32 bias add.
    q = jnp.dot(xq, wq_ref[0], preferred_element_type=jnp.float32) + bq_ref[0]
    k = jnp.dot(xkv, wk_ref[0], preferred_element_type=jnp.float32) + bk_ref[0]
    v = jnp.dot(xkv, wv_ref[0], preferred_element_type=jnp.float32) + bv_ref[0]

    # Fold 1/sqrt(head_dim) into q: O(tq*hd) multiplies instead of an
    # O(tq*S) divide on the score matrix.
    q = q * inv_scale

    # Scores: contract on the last dim of both operands (no explicit k^T).
    s = lax.dot_general(q.astype(jnp.bfloat16), k.astype(jnp.bfloat16),
                        (((1,), (1,)), ((), ())),
                        preferred_element_type=jnp.float32)          # (tq, S)

    # Numerically-stable softmax in f32; reciprocal (EUP) + multiply.
    s_max = jnp.max(s, axis=-1, keepdims=True)
    p = jnp.exp(s - s_max)
    p = p * pl.reciprocal(jnp.sum(p, axis=-1, keepdims=True), approx=False)

    attn_h = jnp.dot(p.astype(jnp.bfloat16), v.astype(jnp.bfloat16),
                     preferred_element_type=jnp.float32)             # (tq, hd)

    # Partial output projection for this head, accumulated over heads.
    acc_ref[...] += jnp.dot(attn_h.astype(jnp.bfloat16), wo_ref[0],
                            preferred_element_type=jnp.float32)      # (tq, H)

    @pl.when(h == pl.num_programs(2) - 1)
    def _finalize():
        o_ref[0] = (acc_ref[...] + bo_ref[...]).astype(o_ref.dtype)


def sequence_parallel_attention(x, params, *, num_heads: int):
    """x: (B, S, H) float32. params: dict with wq,bq,wk,bk,wv,bv,wo,bo (nn.Linear layout)."""
    B, S, H = x.shape
    assert H % num_heads == 0
    hd = H // num_heads

    # Query-tile size: 128 when it divides S (real sizes), else the whole
    # sequence (toy sizes) -> single q tile.
    tq = 128 if (S % 128 == 0) else S
    nqt = S // tq

    bf16, f32 = jnp.bfloat16, jnp.float32

    # Pre-transpose + per-head split in the wrapper (pure layout plumbing):
    #   wq/wk/wv head slab: (nh, H, hd)  so the kernel computes  x @ w  directly
    #   wo head slab:       (nh, hd, H)  so the kernel computes  attn_h @ w
    def _qkv_heads(w):   # w: (H_out, H_in)  (PyTorch nn.Linear layout)
        return w.reshape(num_heads, hd, H).transpose(0, 2, 1).astype(bf16)

    wq = _qkv_heads(params["wq"])
    wk = _qkv_heads(params["wk"])
    wv = _qkv_heads(params["wv"])
    wo = params["wo"].T.reshape(num_heads, hd, H).astype(bf16)

    bq = params["bq"].reshape(num_heads, 1, hd).astype(f32)
    bk = params["bk"].reshape(num_heads, 1, hd).astype(f32)
    bv = params["bv"].reshape(num_heads, 1, hd).astype(f32)
    bo = params["bo"].reshape(1, H).astype(f32)

    xb = x.astype(bf16)

    kernel = functools.partial(_spa_kernel, inv_scale=1.0 / (hd ** 0.5))

    xq_spec   = pl.BlockSpec((1, tq, H), lambda b, qt, h: (b, qt, 0))
    xkv_spec  = pl.BlockSpec((1, S, H),  lambda b, qt, h: (b, 0, 0))
    wqkv_spec = pl.BlockSpec((1, H, hd), lambda b, qt, h: (h, 0, 0))
    bqkv_spec = pl.BlockSpec((1, 1, hd), lambda b, qt, h: (h, 0, 0))
    wo_spec   = pl.BlockSpec((1, hd, H), lambda b, qt, h: (h, 0, 0))
    bo_spec   = pl.BlockSpec((1, H),     lambda b, qt, h: (0, 0))
    out_spec  = pl.BlockSpec((1, tq, H), lambda b, qt, h: (b, qt, 0))

    flops = 8 * B * S * H * H + 4 * B * num_heads * S * S * hd
    transcendentals = B * num_heads * S * S
    bytes_accessed = (2 * B * S * H * 2     # x (bf16, q-tile + kv copies)
                      + 4 * H * H * 2       # weights (bf16)
                      + 4 * H * 4           # biases (f32)
                      + B * S * H * 4)      # output (f32)

    return pl.pallas_call(
        kernel,
        out_shape=jax.ShapeDtypeStruct((B, S, H), x.dtype),
        grid_spec=pltpu.PrefetchScalarGridSpec(
            num_scalar_prefetch=0,
            grid=(B, nqt, num_heads),
            in_specs=[xq_spec, xkv_spec,
                      wqkv_spec, bqkv_spec,   # q
                      wqkv_spec, bqkv_spec,   # k
                      wqkv_spec, bqkv_spec,   # v
                      wo_spec, bo_spec],      # out proj
            out_specs=out_spec,
            scratch_shapes=[pltpu.VMEM((tq, H), jnp.float32)]),
        compiler_params=pltpu.CompilerParams(
            dimension_semantics=("parallel", "parallel", "arbitrary"),
            vmem_limit_bytes=32 * 1024 * 1024),
        cost_estimate=pl.CostEstimate(
            flops=flops, transcendentals=transcendentals,
            bytes_accessed=bytes_accessed),
    )(xb, xb, wq, bq, wk, bk, wv, bv, wo, bo)


def _reference(x, params, *, num_heads: int):
    """Pure-JAX f32 reference mirroring the PyTorch module's forward."""
    B, S, H = x.shape
    hd = H // num_heads

    def linear(y, w, b):
        return y @ w.T + b

    q = linear(x, params["wq"], params["bq"])
    k = linear(x, params["wk"], params["bk"])
    v = linear(x, params["wv"], params["bv"])

    def split(t):  # (B, S, H) -> (B, nh, S, hd)
        return t.reshape(B, S, num_heads, hd).transpose(0, 2, 1, 3)

    q, k, v = split(q), split(k), split(v)
    scale = hd ** 0.5
    qk = jnp.einsum("bhqd,bhkd->bhqk", q, k) / scale
    w = jax.nn.softmax(qk, axis=-1)
    attn = jnp.einsum("bhqk,bhkd->bhqd", w, v)
    attn = attn.transpose(0, 2, 1, 3).reshape(B, S, H)
    return linear(attn, params["wo"], params["bo"])


def _init_params(key, hidden_dim):
    # Deterministic init mimicking nn.Linear's uniform(-1/sqrt(in), 1/sqrt(in)).
    bound = 1.0 / (hidden_dim ** 0.5)
    keys = jax.random.split(key, 8)
    names = ["wq", "bq", "wk", "bk", "wv", "bv", "wo", "bo"]
    params = {}
    for i, name in enumerate(names):
        shape = (hidden_dim, hidden_dim) if name.startswith("w") else (hidden_dim,)
        params[name] = jax.random.uniform(
            keys[i], shape, dtype=jnp.float32, minval=-bound, maxval=bound)
    return params


if __name__ == "__main__":
    batch, seq, hidden, heads = 2, 8, 32, 4

    key = jax.random.PRNGKey(0)
    kx, kp = jax.random.split(key)
    x = jax.random.normal(kx, (batch, seq, hidden), dtype=jnp.float32)
    params = _init_params(kp, hidden)

    out = sequence_parallel_attention(x, params, num_heads=heads)
    out = jax.block_until_ready(out)

    ref = _reference(x, params, num_heads=heads)
    assert out.shape == (batch, seq, hidden)
    # Tolerance reflects bf16 MXU operands (f32 accumulation / f32 softmax).
    assert jnp.allclose(out, ref, atol=1e-2, rtol=1e-2), "mismatch vs reference"

    print("KERNEL_OK")
</pallas_src>

<mosaic_0001>
module attributes {stable_mosaic.version = 11 : i64} {
  func.func @_spa_kernel(%arg0: i32, %arg1: i32, %arg2: i32, %arg3: memref<1x8x32xbf16, #tpu.memory_space<vmem>>, %arg4: memref<1x8x32xbf16, #tpu.memory_space<vmem>>, %arg5: memref<1x32x8xbf16, #tpu.memory_space<vmem>>, %arg6: memref<1x1x8xf32, #tpu.memory_space<vmem>>, %arg7: memref<1x32x8xbf16, #tpu.memory_space<vmem>>, %arg8: memref<1x1x8xf32, #tpu.memory_space<vmem>>, %arg9: memref<1x32x8xbf16, #tpu.memory_space<vmem>>, %arg10: memref<1x1x8xf32, #tpu.memory_space<vmem>>, %arg11: memref<1x8x32xbf16, #tpu.memory_space<vmem>>, %arg12: memref<1x32xf32, #tpu.memory_space<vmem>>, %arg13: memref<1x8x32xf32, #tpu.memory_space<vmem>>, %arg14: memref<8x32xf32, #tpu.memory_space<vmem>>) attributes {dimension_semantics = [#tpu.dimension_semantics<parallel>, #tpu.dimension_semantics<parallel>, #tpu.dimension_semantics<arbitrary>], iteration_bounds = array<i64: 2, 1, 4>, scalar_prefetch = 0 : i64, scratch_operands = 1 : i64, tpu.core_type = #tpu.core_type<tc>, window_params = [{transform_indices = @transform_0, window_bounds = array<i64: 1, 8, 32>}, {transform_indices = @transform_1, window_bounds = array<i64: 1, 8, 32>}, {transform_indices = @transform_2, window_bounds = array<i64: 1, 32, 8>}, {transform_indices = @transform_3, window_bounds = array<i64: 1, 1, 8>}, {transform_indices = @transform_4, window_bounds = array<i64: 1, 32, 8>}, {transform_indices = @transform_5, window_bounds = array<i64: 1, 1, 8>}, {transform_indices = @transform_6, window_bounds = array<i64: 1, 32, 8>}, {transform_indices = @transform_7, window_bounds = array<i64: 1, 1, 8>}, {transform_indices = @transform_8, window_bounds = array<i64: 1, 8, 32>}, {pipeline_mode = #tpu.pipeline_mode<synchronous>, transform_indices = @transform_9, window_bounds = array<i64: 1, 32>}, {transform_indices = @transform_10, window_bounds = array<i64: 1, 8, 32>}]} {
    %c0_i32 = arith.constant 0 : i32
    %0 = arith.cmpi eq, %arg2, %c0_i32 : i32
    %1 = arith.extui %0 : i1 to i32
    %c0_i32_0 = arith.constant 0 : i32
    %2 = arith.cmpi ne, %1, %c0_i32_0 : i32
    scf.if %2 {
      %cst_40 = arith.constant 0.000000e+00 : f32
      %56 = vector.broadcast %cst_40 : f32 to vector<8x32xf32>
      %c0_41 = arith.constant 0 : index
      %c0_42 = arith.constant 0 : index
      %57 = vector.load %arg14[%c0_41, %c0_42] : memref<8x32xf32, #tpu.memory_space<vmem>>, vector<8x32xf32>
      tpu.vector_store %arg14[%c0_41, %c0_42], %56 {strides = array<i32>} : memref<8x32xf32, #tpu.memory_space<vmem>>, vector<8x32xf32>,
    } else {
    }
    %c0 = arith.constant 0 : index
    %c0_1 = arith.constant 0 : index
    %c0_2 = arith.constant 0 : index
    %3 = vector.load %arg3[%c0, %c0_1, %c0_2] : memref<1x8x32xbf16, #tpu.memory_space<vmem>>, vector<1x8x32xbf16>
    %4 = vector.shape_cast %3 : vector<1x8x32xbf16> to vector<8x32xbf16>
    %c0_3 = arith.constant 0 : index
    %c0_4 = arith.constant 0 : index
    %c0_5 = arith.constant 0 : index
    %5 = vector.load %arg4[%c0_3, %c0_4, %c0_5] : memref<1x8x32xbf16, #tpu.memory_space<vmem>>, vector<1x8x32xbf16>
    %6 = vector.shape_cast %5 : vector<1x8x32xbf16> to vector<8x32xbf16>
    %c0_6 = arith.constant 0 : index
    %c0_7 = arith.constant 0 : index
    %c0_8 = arith.constant 0 : index
    %7 = vector.load %arg5[%c0_6, %c0_7, %c0_8] : memref<1x32x8xbf16, #tpu.memory_space<vmem>>, vector<1x32x8xbf16>
    %8 = vector.shape_cast %7 : vector<1x32x8xbf16> to vector<32x8xbf16>
    %cst = arith.constant dense<0.000000e+00> : vector<8x8xf32>
    %9 = tpu.matmul %4, %8, %cst {dimension_numbers = #tpu.dot_dimension_numbers<[1], [0], [0], [1], [0, 0, 1, 1], [], []>} : vector<8x32xbf16>, vector<32x8xbf16>, vector<8x8xf32> -> vector<8x8xf32>
    %c0_9 = arith.constant 0 : index
    %c0_10 = arith.constant 0 : index
    %c0_11 = arith.constant 0 : index
    %10 = vector.load %arg6[%c0_9, %c0_10, %c0_11] : memref<1x1x8xf32, #tpu.memory_space<vmem>>, vector<1x1x8xf32>
    %11 = vector.shape_cast %10 : vector<1x1x8xf32> to vector<1x8xf32>
    %12 = vector.broadcast %11 : vector<1x8xf32> to vector<8x8xf32>
    %13 = arith.addf %9, %12 : vector<8x8xf32>
    %c0_12 = arith.constant 0 : index
    %c0_13 = arith.constant 0 : index
    %c0_14 = arith.constant 0 : index
    %14 = vector.load %arg7[%c0_12, %c0_13, %c0_14] : memref<1x32x8xbf16, #tpu.memory_space<vmem>>, vector<1x32x8xbf16>
    %15 = vector.shape_cast %14 : vector<1x32x8xbf16> to vector<32x8xbf16>
    %cst_15 = arith.constant dense<0.000000e+00> : vector<8x8xf32>
    %16 = tpu.matmul %6, %15, %cst_15 {dimension_numbers = #tpu.dot_dimension_numbers<[1], [0], [0], [1], [0, 0, 1, 1], [], []>} : vector<8x32xbf16>, vector<32x8xbf16>, vector<8x8xf32> -> vector<8x8xf32>
    %c0_16 = arith.constant 0 : index
    %c0_17 = arith.constant 0 : index
    %c0_18 = arith.constant 0 : index
    %17 = vector.load %arg8[%c0_16, %c0_17, %c0_18] : memref<1x1x8xf32, #tpu.memory_space<vmem>>, vector<1x1x8xf32>
    %18 = vector.shape_cast %17 : vector<1x1x8xf32> to vector<1x8xf32>
    %19 = vector.broadcast %18 : vector<1x8xf32> to vector<8x8xf32>
    %20 = arith.addf %16, %19 : vector<8x8xf32>
    %c0_19 = arith.constant 0 : index
    %c0_20 = arith.constant 0 : index
    %c0_21 = arith.constant 0 : index
    %21 = vector.load %arg9[%c0_19, %c0_20, %c0_21] : memref<1x32x8xbf16, #tpu.memory_space<vmem>>, vector<1x32x8xbf16>
    %22 = vector.shape_cast %21 : vector<1x32x8xbf16> to vector<32x8xbf16>
    %cst_22 = arith.constant dense<0.000000e+00> : vector<8x8xf32>
    %23 = tpu.matmul %6, %22, %cst_22 {dimension_numbers = #tpu.dot_dimension_numbers<[1], [0], [0], [1], [0, 0, 1, 1], [], []>} : vector<8x32xbf16>, vector<32x8xbf16>, vector<8x8xf32> -> vector<8x8xf32>
    %c0_23 = arith.constant 0 : index
    %c0_24 = arith.constant 0 : index
    %c0_25 = arith.constant 0 : index
    %24 = vector.load %arg10[%c0_23, %c0_24, %c0_25] : memref<1x1x8xf32, #tpu.memory_space<vmem>>, vector<1x1x8xf32>
    %25 = vector.shape_cast %24 : vector<1x1x8xf32> to vector<1x8xf32>
    %26 = vector.broadcast %25 : vector<1x8xf32> to vector<8x8xf32>
    %27 = arith.addf %23, %26 : vector<8x8xf32>
    %cst_26 = arith.constant 0.353553385 : f32
    %28 = vector.broadcast %cst_26 : f32 to vector<8x8xf32>
    %29 = arith.mulf %13, %28 : vector<8x8xf32>
    %30 = arith.truncf %29 : vector<8x8xf32> to vector<8x8xbf16>
    %31 = arith.truncf %20 : vector<8x8xf32> to vector<8x8xbf16>
    %cst_27 = arith.constant dense<0.000000e+00> : vector<8x8xf32>
    %32 = tpu.matmul %30, %31, %cst_27 {dimension_numbers = #tpu.dot_dimension_numbers<[1], [1], [0], [0], [0, 0, 1, 0], [], []>} : vector<8x8xbf16>, vector<8x8xbf16>, vector<8x8xf32> -> vector<8x8xf32>
    %cst_28 = arith.constant dense<0xFF800000> : vector<8xf32>
    %33 = vector.multi_reduction <maximumf>, %32, %cst_28 [1] : vector<8x8xf32> to vector<8xf32>
    %34 = vector.shape_cast %33 : vector<8xf32> to vector<8x1xf32>
    %35 = vector.broadcast %34 : vector<8x1xf32> to vector<8x8xf32>
    %36 = arith.subf %32, %35 : vector<8x8xf32>
    %37 = math.exp %36 : vector<8x8xf32>
    %cst_29 = arith.constant dense<0.000000e+00> : vector<8xf32>
    %38 = vector.multi_reduction <add>, %37, %cst_29 [1] : vector<8x8xf32> to vector<8xf32>
    %39 = vector.shape_cast %38 : vector<8xf32> to vector<8x1xf32>
    %40 = tpu.reciprocal %39 : vector<8x1xf32> -> vector<8x1xf32>
    %41 = vector.broadcast %40 : vector<8x1xf32> to vector<8x8xf32>
    %42 = arith.mulf %37, %41 : vector<8x8xf32>
    %43 = arith.truncf %42 : vector<8x8xf32> to vector<8x8xbf16>
    %44 = arith.truncf %27 : vector<8x8xf32> to vector<8x8xbf16>
    %cst_30 = arith.constant dense<0.000000e+00> : vector<8x8xf32>
    %45 = tpu.matmul %43, %44, %cst_30 {dimension_numbers = #tpu.dot_dimension_numbers<[1], [0], [0], [1], [0, 0, 1, 1], [], []>} : vector<8x8xbf16>, vector<8x8xbf16>, vector<8x8xf32> -> vector<8x8xf32>
    %c0_31 = arith.constant 0 : index
    %c0_32 = arith.constant 0 : index
    %46 = vector.load %arg14[%c0_31, %c0_32] : memref<8x32xf32, #tpu.memory_space<vmem>>, vector<8x32xf32>
    %47 = arith.truncf %45 : vector<8x8xf32> to vector<8x8xbf16>
    %c0_33 = arith.constant 0 : index
    %c0_34 = arith.constant 0 : index
    %c0_35 = arith.constant 0 : index
    %48 = vector.load %arg11[%c0_33, %c0_34, %c0_35] : memref<1x8x32xbf16, #tpu.memory_space<vmem>>, vector<1x8x32xbf16>
    %49 = vector.shape_cast %48 : vector<1x8x32xbf16> to vector<8x32xbf16>
    %cst_36 = arith.constant dense<0.000000e+00> : vector<8x32xf32>
    %50 = tpu.matmul %47, %49, %cst_36 {dimension_numbers = #tpu.dot_dimension_numbers<[1], [0], [0], [1], [0, 0, 1, 1], [], []>} : vector<8x8xbf16>, vector<8x32xbf16>, vector<8x32xf32> -> vector<8x32xf32>
    %51 = arith.addf %46, %50 : vector<8x32xf32>
    %c0_37 = arith.constant 0 : index
    %c0_38 = arith.constant 0 : index
    %52 = vector.load %arg14[%c0_37, %c0_38] : memref<8x32xf32, #tpu.memory_space<vmem>>, vector<8x32xf32>
    tpu.vector_store %arg14[%c0_37, %c0_38], %51 {strides = array<i32>} : memref<8x32xf32, #tpu.memory_space<vmem>>, vector<8x32xf32>,
    %c3_i32 = arith.constant 3 : i32
    %53 = arith.cmpi eq, %arg2, %c3_i32 : i32
    %54 = arith.extui %53 : i1 to i32
    %c0_i32_39 = arith.constant 0 : i32
    %55 = arith.cmpi ne, %54, %c0_i32_39 : i32
    scf.if %55 {
      %c0_40 = arith.constant 0 : index
      %c0_41 = arith.constant 0 : index
      %56 = vector.load %arg14[%c0_40, %c0_41] : memref<8x32xf32, #tpu.memory_space<vmem>>, vector<8x32xf32>
      %c0_42 = arith.constant 0 : index
      %c0_43 = arith.constant 0 : index
      %57 = vector.load %arg12[%c0_42, %c0_43] : memref<1x32xf32, #tpu.memory_space<vmem>>, vector<1x32xf32>
      %58 = vector.broadcast %57 : vector<1x32xf32> to vector<8x32xf32>
      %59 = arith.addf %56, %58 : vector<8x32xf32>
      %c0_44 = arith.constant 0 : index
      %c0_45 = arith.constant 0 : index
      %c0_46 = arith.constant 0 : index
      %60 = vector.load %arg13[%c0_44, %c0_45, %c0_46] : memref<1x8x32xf32, #tpu.memory_space<vmem>>, vector<1x8x32xf32>
      %61 = vector.shape_cast %60 : vector<1x8x32xf32> to vector<8x32xf32>
      %62 = vector.shape_cast %59 : vector<8x32xf32> to vector<1x8x32xf32>
      tpu.vector_store %arg13[%c0_44, %c0_45, %c0_46], %62 {strides = array<i32>} : memref<1x8x32xf32, #tpu.memory_space<vmem>>, vector<1x8x32xf32>,
    } else {
    }
    return
  }
  func.func @transform_0(%arg0: i32, %arg1: i32, %arg2: i32) -> (i32, i32, i32) {
    %c0_i32 = arith.constant 0 : i32
    %c0_i32_0 = arith.constant 0 : i32
    return %arg0, %arg1, %c0_i32 : i32, i32, i32
  }
  func.func @transform_1(%arg0: i32, %arg1: i32, %arg2: i32) -> (i32, i32, i32) {
    %c0_i32 = arith.constant 0 : i32
    %c0_i32_0 = arith.constant 0 : i32
    %c0_i32_1 = arith.constant 0 : i32
    return %arg0, %c0_i32, %c0_i32_0 : i32, i32, i32
  }
  func.func @transform_2(%arg0: i32, %arg1: i32, %arg2: i32) -> (i32, i32, i32) {
    %c0_i32 = arith.constant 0 : i32
    %c0_i32_0 = arith.constant 0 : i32
    %c0_i32_1 = arith.constant 0 : i32
    return %arg2, %c0_i32, %c0_i32_0 : i32, i32, i32
  }
  func.func @transform_3(%arg0: i32, %arg1: i32, %arg2: i32) -> (i32, i32, i32) {
    %c0_i32 = arith.constant 0 : i32
    %c0_i32_0 = arith.constant 0 : i32
    %c0_i32_1 = arith.constant 0 : i32
    return %arg2, %c0_i32, %c0_i32_0 : i32, i32, i32
  }
  func.func @transform_4(%arg0: i32, %arg1: i32, %arg2: i32) -> (i32, i32, i32) {
    %c0_i32 = arith.constant 0 : i32
    %c0_i32_0 = arith.constant 0 : i32
    %c0_i32_1 = arith.constant 0 : i32
    return %arg2, %c0_i32, %c0_i32_0 : i32, i32, i32
  }
  func.func @transform_5(%arg0: i32, %arg1: i32, %arg2: i32) -> (i32, i32, i32) {
    %c0_i32 = arith.constant 0 : i32
    %c0_i32_0 = arith.constant 0 : i32
    %c0_i32_1 = arith.constant 0 : i32
    return %arg2, %c0_i32, %c0_i32_0 : i32, i32, i32
  }
  func.func @transform_6(%arg0: i32, %arg1: i32, %arg2: i32) -> (i32, i32, i32) {
    %c0_i32 = arith.constant 0 : i32
    %c0_i32_0 = arith.constant 0 : i32
    %c0_i32_1 = arith.constant 0 : i32
    return %arg2, %c0_i32, %c0_i32_0 : i32, i32, i32
  }
  func.func @transform_7(%arg0: i32, %arg1: i32, %arg2: i32) -> (i32, i32, i32) {
    %c0_i32 = arith.constant 0 : i32
    %c0_i32_0 = arith.constant 0 : i32
    %c0_i32_1 = arith.constant 0 : i32
    return %arg2, %c0_i32, %c0_i32_0 : i32, i32, i32
  }
  func.func @transform_8(%arg0: i32, %arg1: i32, %arg2: i32) -> (i32, i32, i32) {
    %c0_i32 = arith.constant 0 : i32
    %c0_i32_0 = arith.constant 0 : i32
    %c0_i32_1 = arith.constant 0 : i32
    return %arg2, %c0_i32, %c0_i32_0 : i32, i32, i32
  }
  func.func @transform_9(%arg0: i32, %arg1: i32, %arg2: i32) -> (i32, i32) {
    %c0_i32 = arith.constant 0 : i32
    %c0_i32_0 = arith.constant 0 : i32
    %c0_i32_1 = arith.constant 0 : i32
    return %c0_i32, %c0_i32_0 : i32, i32
  }
  func.func @transform_10(%arg0: i32, %arg1: i32, %arg2: i32) -> (i32, i32, i32) {
    %c0_i32 = arith.constant 0 : i32
    %c0_i32_0 = arith.constant 0 : i32
    return %arg0, %arg1, %c0_i32 : i32, i32, i32
  }
}

</mosaic_0001>

<bundles_post_ra>
// kernel: tpu_custom_call.1
= control target key start
LH: loop header
LB: loop body
LE: loop exit
PB: predicated region body
PF: predicated region fallthrough
CT: control target
= control target key end

     0   :  { %s1638_s0 = inlined_call_operand.vmem [shape: bf16[2,8,32], index: 0, kind: input, shape index: {}]   ;;  %s1639_s1 = inlined_call_operand.vmem [shape: bf16[2,8,32], index: 1, kind: input, shape index: {}]   ;;  %s1640_s2 = inlined_call_operand.vmem [shape: bf16[4,32,8], index: 2, kind: input, shape index: {}]   ;;  %s1641_s3 = inlined_call_operand.vmem [shape: f32[4,1,8], index: 3, kind: input, shape index: {}]   ;;  %s1642_s4 = inlined_call_operand.vmem [shape: bf16[4,32,8], index: 4, kind: input, shape index: {}]   ;;  %s1643_s5 = inlined_call_operand.vmem [shape: f32[4,1,8], index: 5, kind: input, shape index: {}]   ;;  %s1644_s6 = inlined_call_operand.vmem [shape: bf16[4,32,8], index: 6, kind: input, shape index: {}]   ;;  %s1645_s7 = inlined_call_operand.vmem [shape: f32[4,1,8], index: 7, kind: input, shape index: {}]   ;;  %s1646_s8 = inlined_call_operand.vmem [shape: bf16[4,8,32], index: 8, kind: input, shape index: {}]   ;;  %s1647_s9 = inlined_call_operand.vmem [shape: f32[1,32], index: 9, kind: input, shape index: {}]   ;;  %s1648_s10 = inlined_call_operand.hbm [shape: f32[2,8,32], index: 10, kind: output, shape index: {}]  }
   0x1   :  { %1662 = sst [smem:[#allocation17_spill]] %s1638_s0 }
   0x2   :  { %1663 = sst [smem:[#allocation18_spill]] %s1639_s1 }
   0x3   :  { %1664 = sst [smem:[#allocation19_spill]] %s1640_s2 }
   0x4   :  { %1665 = sst [smem:[#allocation20_spill]] %s1648_s10 }
   0x5   :  { %15 = vsyncpa [#allocation4], 0 }
   0x6   :  { %17 = vsyncpa [#allocation4 + $0x1], 0  ;;  %s1418_s13 = smov 0   ;;  %s1420_s14 = smov 0  }
   0x7   :  { %s1422_s15 = smov 0   ;;  %s1424_s16 = smov 0  }
   0x8   :  { %s1426_s17 = smov 0   ;;  %s1428_s18 = smov 0  }
   0x9   :  { %s1430_s19 = smov 0   ;;  %s1432_s20 = smov 0  }
   0xa LB: > { %1666 = sst [smem:[#allocation6_spill]] %s1329_s13  ;;  %s1082_s21 = sadd.s32 4294967295, %s1357_s20   ;;  %s1357_s20 = sphi %s1432_s20, %s23_s20   ;;  %s1353_s19 = sphi %s1430_s19, %s1697_s19   ;;  %s1349_s18 = sphi %s1428_s18, %s1696_s18   ;;  %s1345_s17 = sphi %s1426_s17, %s1695_s17   ;;  %s1341_s16 = sphi %s1424_s16, %s1694_s16   ;;  %s1337_s15 = sphi %s1422_s15, %s1693_s15   ;;  %s1333_s14 = sphi %s1420_s14, %s1692_s14   ;;  %s1329_s13 = sphi %s1418_s13, %s1691_s13  }
   0xb   : > { %1667 = sst [smem:[#allocation7_spill]] %s1333_s14  ;;  %s1083_s22 = sadd.s32 4294967294, %s1357_s20  }
   0xc   : > { %1668 = sst [smem:[#allocation8_spill]] %s1337_s15  ;;  %s35_s23 = sadd.s32 1, %s1349_s18 }
   0xd   : > { %1669 = sst [smem:[#allocation9_spill]] %s1349_s18  ;;  %p36_p0 = scmp.ge.s32.totalorder %s35_s23, 4 }
   0xe   : > { %1670 = sst [smem:[#allocation10_spill]] %s1353_s19  ;;  %s42_s24 = sadd.s32 1, %s1353_s19 }
   0xf   : > { %1671 = sst [smem:[#allocation11_spill]] %s1357_s20  ;;  %p318_p1 = scmp.ne.s32.totalorder %s1337_s15, %s1333_s14 }
  0x10   : > { %p319_p2 = scmp.eq.s32.totalorder %s1082_s21, 7  ;;  %s1699_s23 = smov (%p36_p0, %s35_s23), 0 }
  0x11   : > { %1672 = sst [smem:[#allocation12_spill]] %s1699_s23  ;;  %s1701_s24 = smov (!%p36_p0, %s42_s24), %s1353_s19 }
  0x12   : > { %p1467_p3 = por %p319_p2, %p318_p1  ;;  %p324_p4 = scmp.ne.s32.totalorder %s1333_s14, %s1329_s13 }
  0x13   : > { %p44_p5 = scmp.ge.s32.totalorder %s1701_s24, 2  ;;  %p325_p6 = scmp.eq.s32.totalorder %s1083_s22, 7 }
  0x14   : > { %s1673_s25 = scalar_select %p1467_p3, 1, 0 }
  0x15   : > { %p1086_p7 = scmp.ge.s32.totalorder %s1357_s20, 1  ;;  %p412_p8 = scmp.lt.s32.totalorder %s1357_s20, 9 }
  0x16   : > { %1674 = sst [smem:[#allocation13_spill]] %s1673_s25  ;;  %s1703_s24 = smov (%p44_p5, %s1701_s24), 0 }
  0x17   : > { %1675 = sst [smem:[#allocation14_spill]] %s1703_s24  ;;  %p1477_p9 = por %p325_p6, %p324_p4 }
  0x18   : > { %p413_p10 = pnand %p1086_p7, %p412_p8  ;;  %s303_s27 = ssub.s32 %s1353_s19, %s1703_s24 }
  0x19   : > { %s1676_s26 = scalar_select %p1477_p9, 1, 0 }
  0x1a   : > { %s308_s28 = sadd.s32 1, %s1337_s15  ;;  %p306_p11 = scmp.eq.s32.totalorder %s303_s27, 0 }
  0x1b   : > { %1677 = sst [smem:[#allocation15_spill]] %s1676_s26  ;;  %416 = sbr.rel (%p413_p10) target bundleno = 1269 (0x4f5), region = 60 }
  0x1c   : > { %s1485_s29 = scalar_select %p306_p11, %s1337_s15, %s308_s28  }
  0x1d   : > { %s1651_s30 = sand.u32 (!%p413_p10), 1, %s1333_s14   ;;  %p484_p12 = scmp.lt.s32.totalorder (!%p413_p10), %s1345_s17, 1 }
  0x1e   : > { %1678 = sst [smem:[#allocation16_spill]] %s1485_s29  ;;  %s1491_s11 = sshll.u32 (!%p413_p10), %s1651_s30, 3 }
  0x1f   : > { %p495_p13 = scmp.lt.s32.totalorder (!%p413_p10), %s1341_s16, 3  ;;  %s1679_s0 = sld [smem:[#allocation17_spill]] (!%p413_p10) }
  0x20   : > { %s1680_s1 = sld [smem:[#allocation18_spill]] (!%p413_p10)  ;;  %s1681_s2 = sld [smem:[#allocation19_spill]] (!%p413_p10) }
  0x21   : > { %s483_s25 = scalar_lea.vmem (!%p413_p10), [#allocation3], %s1491_s11  ;;  %p1097_p0 = scmp.ne.s32.totalorder (!%p413_p10), %s1341_s16, 0 }
  0x22   : > { %s485_s12 = scalar_select %p484_p12, %s1345_s17, 1 }
  0x23   : > { %s1496_s21 = scalar_select %p495_p13, %s1341_s16, 3 }
  0x24   : > { %s1088_s22 = sshll.u32 %s485_s12, 2  ;;  %527 = sbr.rel (%p1097_p0) target bundleno = 43 (0x2b), region = 64  ;;  %vm528_vm0 = vcmask (!%p1097_p0), 261120   ;;  %v1359_v0 = vmov (!%p1097_p0), 0.0  }
  0x25   : > { %s1501_s24 = scalar_lea.vmem %s1679_s0, %s1088_s22  ;;  %s1119_s18 = sshll.u32 %s1496_s21, 4  ;;  %529 = vst.msk [vmem:[#allocation2] sm:$0xff] (!%p1097_p0), %vm528_vm0, %v1359_v0 }
  0x26   : > { %s1506_s30 = scalar_lea.vmem %s1680_s1, %s1088_s22  ;;  %s499_s10 = scalar_lea.vmem %s1681_s2, %s1119_s18 }
  0x27   : > { %s507_s27 = scalar_lea.vmem %s1642_s4, %s1119_s18  ;;  %s510_s14 = scalar_lea.vmem %s1643_s5, %s1496_s21 }
  0x28   : > { %s1526_s22 = scalar_lea.vmem %s1644_s6, %s1119_s18  ;;  %s518_s29 = scalar_lea.vmem %s1645_s7, %s1496_s21 }
  0x29   : > { %s1096_s26 = sshll.u32 %s1496_s21, 2 }
  0x2a   : > { %s1536_s2 = scalar_lea.vmem %s1646_s8, %s1096_s26 }
  0x2b PF: > { %v1253_v1 = vld [vmem:[%s507_s27] sm:$0xff]   ;;  %v1360_v2 = vmov 0.0   ;;  %v1255_v4 = vld [vmem:[%s507_s27 + $0x8] sm:$0xff]   ;;  %vm1361_vm1 = vmmov 0   ;;  %vm555_vm2 = vcmask 261120   ;;  %s1682_s26 = scalar_lea.vmem %s1641_s3, %s1496_s21  ;;  %vm731_vm3 = vcmask 64512  }
  0x2c   : > { %1145 = vmatprep.subr.bf16.mxu1 %v1360_v2  ;;  %1137 = vmatprep.subr.bf16.mxu0 %v1360_v2  ;;  %v1254_v3 = vld [vmem:[%s499_s10] sm:$0xff]   ;;  %v1256_v5 = vld [vmem:[%s499_s10 + $0x8] sm:$0xff]   ;;  %vm794_vm4 = vcmask 1043456   ;;  %p1113_p1 = scmp.ne.s32.totalorder %s1341_s16, 3 }
  0x2d   : > { %1146 = vmatpush3.bf16.msra.mxu1 %v1253_v1  ;;  %1149 = vmatprep.mubr.msk.bf16.mxu1 %vm1361_vm1, %v1360_v2  ;;  %v531_v6 = vld [vmem:[%s1506_s30] sm:$0xf]  ;;  %v1258_v25 = vld [vmem:[%s1526_s22 + $0x8] sm:$0xff]  }
  0x2e   : > { %1147 = vmatprep.subr.bf16.mxu1 %v1360_v2  ;;  %1138 = vmatpush3.bf16.msra.mxu0 %v1254_v3  ;;  %v530_v7 = vld [vmem:[%s1501_s24] sm:$0xf] }
  0x2f   : > { %1139 = vmatprep.subr.bf16.mxu0 %v1360_v2  ;;  %1141 = vmatprep.mubr.msk.bf16.mxu0 %vm1361_vm1, %v1360_v2  ;;  %v1102_v8 = vld [vmem:[%s510_s14] ss:$0 sm:$0xff] }
  0x30   : > { %v1098_v9 = vld [vmem:[%s1682_s26] ss:$0 sm:$0xff] }
  0x31   : > { %1148 = vmatpush3.bf16.msra.mxu1 %v1255_v4  ;;  %v1257_v24 = vld [vmem:[%s1526_s22] sm:$0xff]  }
  0x32   : > { %1140 = vmatpush3.bf16.msra.mxu0 %v1256_v5  ;;  %1161 = vmatprep.subr.bf16.mxu1 %v1360_v2  ;;  %v1106_v39 = vld [vmem:[%s518_s29] ss:$0 sm:$0xff] }
  0x33   : > { %1153 = vmatprep.subr.bf16.mxu0 %v1360_v2  ;;  %v840_v44 = vld [vmem:[%s1536_s2] sm:$0xf] }
  0x34   : > { %1150 = vmatmul.mubr.msk.bf16.vlgmr.msra.gmra.mrb[0].mxu1 %vm555_vm2, %v531_v6  ;;  %v845_v45 = vsel %vm794_vm4, %v840_v44, 0  ;;  %v838_v55 = vld [vmem:[#allocation2] sm:$0xff] }
  0x35   : > { %1142 = vmatmul.mubr.msk.bf16.vlgmr.msra.gmra.mrb[0].mxu0 %vm555_vm2, %v530_v7  ;;  %1163 = vmatprep.mubr.msk.bf16.mxu1 %vm1361_vm1, %v1360_v2  ;;  %v1114_v62 = vld [vmem:[%s1647_s9] ss:$0 sm:$0xff] (!%p1113_p1) }
  0x36   : > { %1157 = vmatprep.mubr.msk.bf16.mxu0 %vm1361_vm1, %v1360_v2  ;;  %1154 = vmatpush3.bf16.msra.mxu0 %v1257_v24 }
  0x37   : > { %1155 = vmatprep.subr.bf16.mxu0 %v1360_v2 }
  0x3a   : > { %1156 = vmatpush3.bf16.msra.mxu0 %v1258_v25 }
  0x3b   : > { %1167 = vmatprep.subr.bf16.mxu0 %v1360_v2 }
  0x3d   : > { %1158 = vmatmul.mubr.msk.bf16.vlgmr.msra.gmra.mrb[4].mxu0 %vm555_vm2, %v531_v6 }
  0x3e   : > { %1169 = vmatprep.mubr.msk.bf16.mxu0 %vm1361_vm1, %v1360_v2 }
 0x107   : > { %v659_v10 = vpop.f32.mrb[0].mxu1 }
 0x108   : > { %v660_v11 = vadd.f32 %v1102_v8, %v659_v10  ;;  %v1151_v12 = vpop.f32.mrb[1].mxu1  ;;  %v593_v13 = vpop.f32.mrb[0].mxu0 }
 0x109   : > { %v662_v14 = vpop.f32.mrb[2].mxu1  ;;  %v594_v15 = vadd.f32 %v1098_v9, %v593_v13  ;;  %v1143_v16 = vpop.f32.mrb[1].mxu0 }
 0x10a   : > { %v730_v17 = vpack.c.bf16 %v660_v11, %v660_v11  ;;  %v1152_v18 = vpop.f32.mrb[3].mxu1  ;;  %v596_v19 = vpop.f32.mrb[2].mxu0 }
 0x10b   : > { %v1144_v20 = vpop.f32.mrb[3].mxu0  ;;  %v728_v22 = vmul.f32 0.35355338, %v594_v15 }
 0x10c   : > { %v736_v21 = vsel %vm731_vm3, %v730_v17, 0 }
 0x10d   : > { %1162 = vmatpush3.bf16.xpose.msra.mxu1 %v736_v21  ;;  %v729_v23 = vpack.c.bf16 %v728_v22, %v728_v22 }
 0x10e   : > { %1173 = vmatprep.subr.bf16.mxu1 %v1360_v2 }
 0x110   : > { %v722_v36 = vpop.f32.mrb[4].mxu0 }
 0x111   : > { %v1159_v37 = vpop.f32.mrb[5].mxu0  ;;  %v723_v41 = vadd.f32 %v1106_v39, %v722_v36 }
 0x112   : > { %v725_v38 = vpop.f32.mrb[6].mxu0 }
 0x113   : > { %v1160_v40 = vpop.f32.mrb[7].mxu0  ;;  %v790_v42 = vpack.c.bf16 %v723_v41, %v723_v41 }
 0x114   : > { %1164 = vmatmul.mubr.msk.bf16.vlgmr.msra.gmra.mrb[4].mxu1 %vm731_vm3, %v729_v23 }
 0x115   : > { %1175 = vmatprep.mubr.msk.bf16.mxu1 %vm1361_vm1, %v1360_v2  ;;  %v796_v43 = vsel %vm794_vm4, %v790_v42, 0  ;;  %1174 = vmatpush3.bf16.msra.mxu1 %v845_v45 }
 0x116   : > { %1168 = vmatpush3.bf16.msra.mxu0 %v796_v43 }
 0x1e7   : > { %v772_v26 = vpop.f32.mrb[4].mxu1 }
 0x1e8   : > { %v1165_v27 = vpop.f32.mrb[5].mxu1  ;;  %v778_v28 = vsel %vm731_vm3, %v772_v26, -inf }
 0x1e9   : > { %779 = vmax.xlane.f32.xlu0 %v778_v28  ;;  %v775_v29 = vpop.f32.mrb[6].mxu1 }
 0x1ea   : > { %v1166_v30 = vpop.f32.mrb[7].mxu1 }
 0x276   : > { %v780_v31 = vpop.xlane.xlu0 %779 }
 0x277   : > { %v781_v32 = vsub.f32 %v772_v26, %v780_v31 }
 0x279   : > { %v782_v33 = vmul.f32 1.442695, %v781_v32 }
 0x27b   : > { %1259 = vpow2.f32 %v782_v33 }
 0x285   : > { %v1260_v34 = vpop.eup %1259 }
 0x286   : > { %v784_v35 = vsel %vm731_vm3, %v1260_v34, 0.0 }
 0x287   : > { %785 = vadd.xlane.f32.xlu0 %v784_v35 }
 0x314   : > { %v786_v46 = vpop.xlane.xlu0 %785 }
 0x315   : > { %1261 = vrcp.f32 %v786_v46 }
 0x31f   : > { %v1262_v47 = vpop.eup %1261 }
 0x320   : > { %v788_v48 = vmul.f32 %v1262_v47, %v1260_v34 }
 0x322   : > { %v789_v49 = vpack.c.bf16 %v788_v48, %v788_v48 }
 0x324   : > { %1170 = vmatmul.mubr.msk.bf16.vlgmr.msra.gmra.mrb[8].mxu0 %vm731_vm3, %v789_v49 }
 0x3f7   : > { %v832_v50 = vpop.f32.mrb[8].mxu0 }
 0x3f8   : > { %v839_v51 = vpack.c.bf16 %v832_v50, %v832_v50  ;;  %v1171_v52 = vpop.f32.mrb[9].mxu0 }
 0x3f9   : > { %v835_v53 = vpop.f32.mrb[10].mxu0 }
 0x3fa   : > { %v1172_v54 = vpop.f32.mrb[11].mxu0  ;;  %1176 = vmatmul.mubr.msk.bf16.vlgmr.msra.gmra.mrb[8].mxu1 %vm731_vm3, %v839_v51 }
 0x4ca   : > { %892 = sbr.rel (%p1113_p1) target bundleno = 1243 (0x4db), region = 68 }
 0x4cd   : > { %v881_v56 = vpop.f32.mrb[8].mxu1 }
 0x4ce   : > { %v887_v57 = vadd.f32 %v881_v56, %v838_v55  ;;  %v1177_v58 = vpop.f32.mrb[9].mxu1 }
 0x4cf   : > { %v884_v59 = vpop.f32.mrb[10].mxu1 }
 0x4d0   : > { %888 = vst.msk [vmem:[#allocation2] sm:$0xff] %vm555_vm2, %v887_v57  ;;  %v1178_v60 = vpop.f32.mrb[11].mxu1 }
 0x4d7   : > { %v893_v61 = vld [vmem:[#allocation2] sm:$0xff] }
 0x4d8   : > { %v901_v63 = vadd.f32 %v1114_v62, %v893_v61 }
 0x4da   : > { %902 = vst.msk [vmem:[%s483_s25] sm:$0xff] %vm555_vm2, %v901_v63 }
 0x4db PF: > { %s1683_s21 = sld [smem:[#allocation7_spill]]  ;;  %s1116_s27 = sshll.u32 %s1345_s17, 7 }
 0x4dc   : > { %s1685_s16 = sld [smem:[#allocation20_spill]]  ;;  %s918_s15 = sshll.u32 %s483_s25, 4  ;;  %s919_s15 = int_to_ptr.vmem [resolvable:$true] %s918_s15 }
 0x4dd   : > { %s1263_s20 = scalar_lea.vmem %s919_s15, 128  ;;  %s1362_s0 = smov [#allocation3]  }
 0x4de   : > { %p1264_p2 = scmp.ne.s32.totalorder %s919_s15, %s1263_s20  ;;  %s1267_s1 = sshll.u32 %s1362_s0, 4  ;;  %s1268_s1 = int_to_ptr.vmem [resolvable:$false] %s1267_s1 }
 0x4df   : > { %s1269_s10 = scalar_lea.vmem %s1268_s1, 256  ;;  %p1270_p6 = scmp.lt.s32.totalorder %s919_s15, %s1268_s1 }
 0x4e0   : > { %p1265_p4 = pnand %p1264_p2, %p1467_p3  ;;  %p1271_p7 = scmp.lt.s32.totalorder %s1269_s10, %s1263_s20 }
 0x4e1   : > { %s1687_s29 = sand.u32 1, %s1683_s21  }
 0x4e2   : > { %s1686_s23 = smov %s1685_s16  ;;  %s1587_s22 = scalar_lea.hbm %s1685_s16, %s1116_s27 }
 0x4e3   : > { %s904_s13 = scalar_lea.sflag [#allocation4], %s1687_s29  ;;  %p1266_p5 = pneg %p1265_p4 }
 0x4e4   : > { %p1272_p8 = por %p1271_p7, %p1270_p6 }
 0x4e6   : > { %p1273_p10 = pnand %p1272_p8, %p1266_p5 }
 0x4e8   : > { %1276 = shalt.err (!%p1273_p10)
}
 0x4e9   : > { %s1277_s17 = scalar_lea.hbm %s1587_s22, 128  ;;  %s1281_s18 = scalar_lea.hbm %s1686_s23, 256 }
 0x4ea   : > { %p1278_p11 = scmp.ne.s32.totalorder %s1587_s22, %s1277_s17  ;;  %p1282_p0 = scmp.lt.u32.totalorder %s1587_s22, %s1686_s23 }
 0x4eb   : > { %p1283_p1 = scmp.lt.u32.totalorder %s1281_s18, %s1277_s17  ;;  %p1285_p4 = scmp.lt.u32.totalorder %s1277_s17, %s1587_s22 }
 0x4ec   : > { %p1279_p12 = pnand %p1278_p11, %p1467_p3 }
 0x4ed   : > { %p1284_p2 = por %p1283_p1, %p1282_p0 }
 0x4ee   : > { %p1280_p13 = pneg %p1279_p12 }
 0x4ef   : > { %p1286_p5 = por %p1285_p4, %p1284_p2 }
 0x4f1   : > { %p1287_p6 = pnand %p1286_p5, %p1280_p13 }
 0x4f3   : > { %1290 = shalt.err (!%p1287_p6)
}
 0x4f4   : > { %1179 = dma.vmem_to_hbm [thread:$0]  (%p1467_p3), %s919_s15, 128, %s1587_s22, %s904_s13  }
 0x4f5 PF: > { %s1688_s24 = sld [smem:[#allocation11_spill]]  ;;  %s1689_s2 = sld [smem:[#allocation6_spill]] }
 0x4fb   : > { %p1185_p7 = scmp.ge.s32.totalorder %s1688_s24, 2  ;;  %s930_s21 = sand.u32 1, %s1689_s2  }
 0x4fc   : > { %s931_s27 = scalar_lea.sflag [#allocation4], %s930_s21 }
 0x4fd   : > { %p1182_p8 = pnand %p1185_p7, %p1477_p9 }
 0x4ff   : > { %1324 = dma.done.wait (!%p1182_p8), %s931_s27, 128  }
 0x500   : > { %1326 = vsyncadd (!%p1182_p8), %s931_s27, 4294967168  ;;  %s23_s20 = sadd.s32 1, %s1688_s24   ;;  %s1691_s13 = sld [smem:[#allocation7_spill]] }
 0x501   : > { %p20_p10 = scmp.ge.s32.totalorder %s23_s20, 10   ;;  %s1692_s14 = sld [smem:[#allocation8_spill]] }
 0x502   : > { %s1693_s15 = sld [smem:[#allocation16_spill]]  ;;  %s1694_s16 = sld [smem:[#allocation9_spill]] }
 0x503   : > { %s1695_s17 = sld [smem:[#allocation10_spill]]  ;;  %s1696_s18 = sld [smem:[#allocation12_spill]] }
 0x504   : > { %s1697_s19 = sld [smem:[#allocation14_spill]]  ;;  %22 = sbr.rel (!%p20_p10) target bundleno = 10 (0xa), region = 127 }
 0x50b   :  { %936 = vsyncpa [#allocation4], 1 }
 0x50c   :  { %938 = vsyncpa [#allocation4 + $0x1], 1 }

</bundles_post_ra>
